<compile_context>
chip_gen: v5e
topology: v5e:2x2
jax: 0.10.0
libtpu: 0.0.40
codegen_flags: <defaults>
</compile_context>

<pallas_src>
import math

import jax
import jax.numpy as jnp
from jax import lax
from jax.experimental import pallas as pl
from jax.experimental.pallas import tpu as pltpu


# -----------------------------------------------------------------------------
# Kernel
# -----------------------------------------------------------------------------
def _make_pgn_kernel(tq, n_vocab_tiles, n_vext_tiles):
    """Builds the fused PGN kernel.

    tq            : target-length chunk for the j==0 attention phase
    n_vocab_tiles : number of Vext tiles that overlap the real vocab [0, V)
    n_vext_tiles  : total number of Vext tiles (grid dim 1 extent)
    """
    f32 = jnp.float32
    bf16 = jnp.bfloat16

    def kernel(
        enc_ref,        # (BB, S, D)   bf16 encoder_out block
        dec_out_ref,    # (BB, T, D)   bf16 decoder_out block
        dec_in_ref,     # (BB, T, D)   bf16 decoder_in block
        vocab_ref,      # (BB, T, TV)  bf16 vocab_dist tile (clamped index_map)
        src_ref,        # (BB, S, 1)   int32 extended-vocab ids
        mask_ref,       # (BB, 1, S)   int32 combined mask (nonzero => masked)
        wq_ref, bq_ref,  # (D, D) bf16 (1/sqrt(D) folded in), (1, D) f32
        wk_ref, bk_ref,  # (D, D) bf16, (1, D) f32
        wv_ref, bv_ref,  # (D, D) bf16, (1, D) f32
        wo_ref, bo_ref,  # (D, D) bf16, (1, D) f32
        wpg_ref,        # (3, D) f32   rows: [wc; wdo; wdi]
        bpg_ref,        # (1, 1) f32   combined p_gen bias
        out_ref,        # (BB, T, TV)  f32 final-distribution tile
        att_scr,        # (BB, T, S)   bf16 scratch: (1 - p_gen) * att_dist
        pgen_scr,       # (BB, T, 1)   f32  scratch: p_gen
    ):
        j = pl.program_id(1)
        BB, T, D = dec_out_ref.shape
        S = enc_ref.shape[1]
        TV = out_ref.shape[-1]
        n_chunks = T // tq

        # ---- attention + p_gen, computed once per batch block ----------------
        @pl.when(j == 0)
        def _attention_and_pgen():
            # K/V projections over the full source once (bf16 MXU, f32 acc).
            encf = enc_ref[...].reshape(BB * S, D)                 # bf16
            k = jnp.dot(encf, wk_ref[...], preferred_element_type=f32) + bk_ref[...]
            v = jnp.dot(encf, wv_ref[...], preferred_element_type=f32) + bv_ref[...]
            k3 = k.reshape(BB, S, D).astype(bf16)
            v3 = v.reshape(BB, S, D).astype(bf16)
            masked = mask_ref[...] != 0                            # (BB, 1, S)
            wpg = wpg_ref[...]                                     # (3, D) f32

            def chunk(c):
                q0 = c * tq
                if not isinstance(q0, int):
                    q0 = pl.multiple_of(q0, tq)
                dec = dec_out_ref[:, pl.ds(q0, tq), :]             # (BB,tq,D) bf16
                din = dec_in_ref[:, pl.ds(q0, tq), :]
                decf = dec.reshape(BB * tq, D)
                dinf = din.reshape(BB * tq, D)

                # Q projection (1/sqrt(D) already folded into wq/bq).
                q = jnp.dot(decf, wq_ref[...], preferred_element_type=f32) + bq_ref[...]
                q3 = q.reshape(BB, tq, D).astype(bf16)

                aw = jnp.einsum("bte,bse->bts", q3, k3,
                                preferred_element_type=f32)        # (BB,tq,S)
                # masked exponentials + clamped denominator: one select pass,
                # no -inf / NaN cleanup, fully-masked rows -> all-zero scores.
                m = jnp.max(aw, axis=-1, keepdims=True)
                e = jnp.where(masked, f32(0.0), jnp.exp(aw - m))
                denom = jnp.maximum(jnp.sum(e, axis=-1, keepdims=True), f32(1e-30))
                score = e * pl.reciprocal(denom, approx=True)       # EUP slot
                # TODO(synk): nn.Dropout on the scores is identity in eval mode;
                # train-mode dropout is not implemented.

                ctx = jnp.einsum("bts,bse->bte", score.astype(bf16), v3,
                                 preferred_element_type=f32)        # (BB,tq,D)
                ctxf = jnp.dot(ctx.reshape(BB * tq, D).astype(bf16), wo_ref[...],
                               preferred_element_type=f32) + bo_ref[...]

                # p_gen: VPU multiply + lane reduction (no N=1 MXU matmuls).
                pg_logit = jnp.sum(ctxf * wpg[0:1, :]
                                   + decf * wpg[1:2, :]
                                   + dinf * wpg[2:3, :],
                                   axis=-1, keepdims=True) + bpg_ref[...]
                p_gen = jax.nn.sigmoid(pg_logit).reshape(BB, tq, 1)

                pgen_scr[:, pl.ds(q0, tq), :] = p_gen
                att_scr[:, pl.ds(q0, tq), :] = ((1.0 - p_gen) * score).astype(bf16)

            if n_chunks <= 1:
                chunk(0)
            else:
                def body(c, carry):
                    chunk(c)
                    return carry
                lax.fori_loop(0, n_chunks, body, 0)

        # ---- per-Vext-tile: copy-scatter (one-hot matmul) + generator path ----
        ids_local = src_ref[...] - j * TV                            # (BB, S, 1)
        col = lax.broadcasted_iota(jnp.int32, (BB, S, TV), 2)        # local cols
        onehot = (ids_local == col).astype(bf16)                     # (BB, S, TV)
        copy = jnp.einsum("bts,bsv->btv", att_scr[...], onehot,
                          preferred_element_type=f32)                # (BB, T, TV)

        if n_vocab_tiles >= n_vext_tiles:
            # every tile overlaps the real vocab (padding of the boundary tile
            # is zeros, so the add is a no-op there)
            out_ref[...] = pgen_scr[...] * vocab_ref[...].astype(f32) + copy
        else:
            @pl.when(j < n_vocab_tiles)
            def _gen_plus_copy():
                out_ref[...] = pgen_scr[...] * vocab_ref[...].astype(f32) + copy

            @pl.when(j >= n_vocab_tiles)
            def _copy_only():                                        # pure-OOV tile
                out_ref[...] = copy

    return kernel


# -----------------------------------------------------------------------------
# Wrapper helpers
# -----------------------------------------------------------------------------
def _round_up(x, m):
    return (x + m - 1) // m * m


def _maybe_buffered_spec(shape, index_map, buffers=None):
    """BlockSpec with an optional pipeline depth; falls back if unsupported."""
    if buffers is not None and hasattr(pl, "Buffered"):
        try:
            return pl.BlockSpec(shape, index_map, pipeline_mode=pl.Buffered(buffers))
        except TypeError:   # pipeline_mode kwarg not available in this version
            pass
    return pl.BlockSpec(shape, index_map)


def _tpu_vmem_capacity_bytes():
    try:
        info = pltpu.get_tpu_info()
        cap = getattr(info, "vmem_capacity_bytes", None)
        if cap:
            return int(cap)
    except Exception:
        pass
    return 64 * 1024 * 1024   # conservative (v7x-sized) fallback


def _choose_tq(t, cap=256):
    """Target-length chunk for the j==0 attention phase (static shapes only)."""
    if t <= cap:
        return t
    for tq in (256, 128, 64, 32, 16, 8):
        if tq <= cap and t % tq == 0:
            return tq
    return t


def _vmem_estimate(bb, s, t, tq, d, tv, out_bufs):
    """Rough per-core VMEM model used to size the batch block."""
    bf, f4, i4 = 2, 4, 4
    est = 0
    # double-buffered activation blocks (enc, dec_out, dec_in, vocab tile, ids, mask)
    est += 2 * bb * (s * d * bf + 2 * t * d * bf + t * tv * bf + 2 * s * i4)
    # output tiles
    est += out_bufs * bb * t * tv * f4
    # constant weights / biases (conservatively assume double-buffered)
    est += 2 * (4 * d * d * bf + 4 * d * f4 + 3 * d * f4 + f4)
    # persistent scratch
    est += bb * t * s * bf + bb * t * f4
    # transient peak: max(attention-chunk temporaries, per-tile scatter temporaries)
    attn_tmp = bb * s * d * (f4 + bf) * 2 + bb * tq * (3 * s * f4 + d * (3 * f4 + bf))
    tile_tmp = bb * s * tv * bf + bb * t * tv * f4
    est += max(attn_tmp, tile_tmp)
    return est


# -----------------------------------------------------------------------------
# Wrapper
# -----------------------------------------------------------------------------
def pointer_generator_network(
    encoder_out, decoder_out, vocab_dist, decoder_in,
    src_ext, max_oov_len, params,
    padding_mask=None, special_token_mask=None,
    *, vext_tile_cap=None, batch_block=None, return_padded=False,
):
    B, S, D = encoder_out.shape
    T = decoder_out.shape[1]
    V = vocab_dist.shape[-1]             # vocab size (== d_model in this module)
    Vext = V + int(max_oov_len)

    # --- generation-aware sizing ----------------------------------------------
    vmem_cap = _tpu_vmem_capacity_bytes()
    vmem_limit = max(min(int(vmem_cap * 0.75), vmem_cap - (8 << 20)), 16 << 20)
    if vext_tile_cap is None:
        # wider tiles on 128-MiB parts (v5e/v6e), narrower on v7x
        vext_tile_cap = 1024 if vmem_cap >= (100 << 20) else 512

    v128 = _round_up(Vext, 128)
    TV = v128 if v128 <= vext_tile_cap else vext_tile_cap
    Vpad = _round_up(Vext, TV)
    n_vt = Vpad // TV

    # vocab is padded only up to the next tile boundary (<= TV-1 columns), NOT
    # out to the extended vocab; pure-OOV tiles reuse the last valid tile.
    Vvpad = min(_round_up(V, TV), Vpad)
    n_vocab_tiles = Vvpad // TV

    TQ = _choose_tq(T)

    # --- batch blocking from the VMEM model ------------------------------------
    out_bufs = 3 if n_vt >= 3 else 2
    if batch_block is None:
        budget = int(vmem_limit * 0.65)    # headroom for compiler scratch / vregs
        batch_block = 1
        for cand in range(min(B, 8), 0, -1):
            if B % cand:
                continue
            if B >= 4 and B // cand < 2:
                continue                   # keep >=2 batch steps for megacore
            if _vmem_estimate(cand, S, T, TQ, D, TV, out_bufs) <= budget:
                batch_block = cand
                break
    BB = batch_block
    assert B % BB == 0, "batch_block must divide batch size"

    # --- combined attention mask (nonzero => masked out) -----------------------
    pad = jnp.zeros((B, 1, S), bool) if padding_mask is None else padding_mask.astype(bool)
    sp = jnp.ones((B, 1, S), bool) if special_token_mask is None else special_token_mask.astype(bool)
    attn_mask = (pad | jnp.logical_not(sp)).astype(jnp.int32)

    src_ext_col = src_ext.astype(jnp.int32)[..., None]             # (B, S, 1)

    # --- bf16 activation / vocab streams (f32 accumulation happens in-kernel) --
    act = jnp.bfloat16
    enc_b = encoder_out.astype(act)
    dec_b = decoder_out.astype(act)
    din_b = decoder_in.astype(act)
    vocab_b = vocab_dist.astype(act)
    if Vvpad > V:    # pad only the last partial vocab tile with zeros (cheap)
        vocab_b = jnp.concatenate(
            [vocab_b, jnp.zeros((B, T, Vvpad - V), act)], axis=-1)

    # --- weights: fold 1/sqrt(D) into Wq/bq; bf16 weights for the MXU ----------
    inv_scale = 1.0 / math.sqrt(D)
    wq = (params["wq"] * inv_scale).astype(jnp.bfloat16)
    bq = (params["bq"] * inv_scale).astype(jnp.float32)
    wk = params["wk"].astype(jnp.bfloat16)
    bk = params["bk"].astype(jnp.float32)
    wv = params["wv"].astype(jnp.bfloat16)
    bv = params["bv"].astype(jnp.float32)
    wo = params["wo"].astype(jnp.bfloat16)
    bo = params["bo"].astype(jnp.float32)
    wpg = jnp.concatenate(
        [params["wc"], params["wdo"], params["wdi"]], axis=0).astype(jnp.float32)
    bpg = params["bpg"].astype(jnp.float32)

    # --- specs ------------------------------------------------------------------
    batch_map = lambda b, j: (b, 0, 0)
    vtile_map = lambda b, j: (b, 0, j)
    if n_vocab_tiles >= n_vt:
        vocab_map = vtile_map
    else:
        last_vocab = n_vocab_tiles - 1
        vocab_map = lambda b, j: (b, 0, jnp.minimum(j, last_vocab))
    const2 = lambda b, j: (0, 0)
    wspec = lambda shp: _maybe_buffered_spec(shp, const2, 1)   # single-buffer consts

    in_specs = [
        pl.BlockSpec((BB, S, D), batch_map),                    # encoder_out
        pl.BlockSpec((BB, T, D), batch_map),                    # decoder_out
        pl.BlockSpec((BB, T, D), batch_map),                    # decoder_in
        _maybe_buffered_spec((BB, T, TV), vocab_map,
                             3 if n_vocab_tiles >= 3 else None),  # vocab tile
        pl.BlockSpec((BB, S, 1), batch_map),                    # src_ext ids
        pl.BlockSpec((BB, 1, S), batch_map),                    # combined mask
        wspec((D, D)), wspec((1, D)),                           # Wq, bq
        wspec((D, D)), wspec((1, D)),                           # Wk, bk
        wspec((D, D)), wspec((1, D)),                           # Wv, bv
        wspec((D, D)), wspec((1, D)),                           # Wo, bo
        wspec((3, D)),                                          # stacked p_gen rows
        wspec((1, 1)),                                          # combined p_gen bias
    ]

    grid_spec = pltpu.PrefetchScalarGridSpec(
        num_scalar_prefetch=0,
        grid=(B // BB, n_vt),
        in_specs=in_specs,
        out_specs=_maybe_buffered_spec((BB, T, TV), vtile_map,
                                       3 if n_vt >= 3 else None),
        scratch_shapes=[
            pltpu.VMEM((BB, T, S), jnp.bfloat16),   # (1 - p_gen) * att_dist
            pltpu.VMEM((BB, T, 1), jnp.float32),    # p_gen
        ],
    )

    kernel = _make_pgn_kernel(TQ, n_vocab_tiles, n_vt)

    out = pl.pallas_call(
        kernel,
        out_shape=jax.ShapeDtypeStruct((B, T, Vpad), jnp.float32),
        grid_spec=grid_spec,
        compiler_params=pltpu.CompilerParams(
            dimension_semantics=("parallel", "arbitrary"),
            vmem_limit_bytes=int(vmem_limit),
        ),
    )(
        enc_b, dec_b, din_b, vocab_b, src_ext_col, attn_mask,
        wq, bq, wk, bk, wv, bv, wo, bo, wpg, bpg,
    )

    if return_padded or Vpad == Vext:
        return out           # skip the extra slice copy when the consumer allows
    return out[..., :Vext]


# -----------------------------------------------------------------------------
# Deterministic parameter init (xavier-uniform weights, small uniform biases)
# -----------------------------------------------------------------------------
def init_params(key, d_model):
    def xavier(k, shape, fan_in, fan_out):
        bound = math.sqrt(6.0 / (fan_in + fan_out))
        return jax.random.uniform(k, shape, jnp.float32, -bound, bound)

    def bias(k, fan_in, shape):
        bound = 1.0 / math.sqrt(fan_in)
        return jax.random.uniform(k, shape, jnp.float32, -bound, bound)

    keys = jax.random.split(key, 16)
    D = d_model
    return {
        "wq": xavier(keys[0], (D, D), D, D), "bq": bias(keys[1], D, (1, D)),
        "wk": xavier(keys[2], (D, D), D, D), "bk": bias(keys[3], D, (1, D)),
        "wv": xavier(keys[4], (D, D), D, D), "bv": bias(keys[5], D, (1, D)),
        "wo": xavier(keys[6], (D, D), D, D), "bo": bias(keys[7], D, (1, D)),
        # Linear(d_model, 1) weights stored as (1, D) rows
        "wc":  xavier(keys[8],  (1, D), D, 1),
        "wdo": xavier(keys[9],  (1, D), D, 1),
        "wdi": xavier(keys[10], (1, D), D, 1),
        # sum of the three Linear(d_model, 1) biases
        "bpg": (bias(keys[11], D, (1, 1)) + bias(keys[12], D, (1, 1))
                + bias(keys[13], D, (1, 1))),
    }


# -----------------------------------------------------------------------------
# Plain-JAX reference (mirrors the PyTorch forward, eval mode, full f32)
# -----------------------------------------------------------------------------
def reference_forward(encoder_out, decoder_out, vocab_dist, decoder_in,
                      src_ext, max_oov_len, params, padding_mask, special_token_mask):
    B, S, D = encoder_out.shape
    T = decoder_out.shape[1]
    V = vocab_dist.shape[-1]
    Vext = V + max_oov_len
    hp = jax.lax.Precision.HIGHEST

    q = jnp.einsum("btd,de->bte", decoder_out, params["wq"], precision=hp) + params["bq"]
    k = jnp.einsum("bsd,de->bse", encoder_out, params["wk"], precision=hp) + params["bk"]
    v = jnp.einsum("bsd,de->bse", encoder_out, params["wv"], precision=hp) + params["bv"]

    aw = jnp.einsum("bte,bse->bts", q, k, precision=hp) / math.sqrt(D)
    aw = jnp.where(padding_mask != 0, -jnp.inf, aw)
    aw = jnp.where(special_token_mask == 0, -jnp.inf, aw)
    m = jnp.max(aw, axis=-1, keepdims=True)
    e = jnp.exp(aw - m)
    score = e / jnp.sum(e, axis=-1, keepdims=True)
    score = jnp.nan_to_num(score)

    ctx = jnp.einsum("bts,bse->bte", score, v, precision=hp)
    ctx = jnp.einsum("bte,ef->btf", ctx, params["wo"], precision=hp) + params["bo"]

    pg = jax.nn.sigmoid(
        jnp.einsum("btd,od->bto", ctx, params["wc"], precision=hp)
        + jnp.einsum("btd,od->bto", decoder_out, params["wdo"], precision=hp)
        + jnp.einsum("btd,od->bto", decoder_in, params["wdi"], precision=hp)
        + params["bpg"]
    )

    ext = jnp.concatenate(
        [vocab_dist, jnp.zeros((B, T, max_oov_len), jnp.float32)], axis=-1)
    ext = pg * ext
    att = (1.0 - pg) * score
    onehot = jax.nn.one_hot(src_ext, Vext, dtype=jnp.float32)         # (B, S, Vext)
    return ext + jnp.einsum("bts,bsv->btv", att, onehot, precision=hp)


# -----------------------------------------------------------------------------
if __name__ == "__main__":
    B, S, T, D = 2, 8, 8, 32
    max_oov_len = 4

    key = jax.random.PRNGKey(0)
    k_enc, k_dec, k_voc, k_din, k_src, k_par = jax.random.split(key, 6)

    encoder_out = jax.random.normal(k_enc, (B, S, D), jnp.float32)
    decoder_out = jax.random.normal(k_dec, (B, T, D), jnp.float32)
    vocab_dist = jax.nn.softmax(jax.random.normal(k_voc, (B, T, D), jnp.float32), axis=-1)
    decoder_in = jax.random.normal(k_din, (B, T, D), jnp.float32)
    src_ext = jax.random.randint(k_src, (B, S), 0, D + max_oov_len, jnp.int32)

    # padding mask: last 2 source positions are padding (masked out)
    padding_mask = jnp.zeros((B, 1, S), jnp.int32).at[:, :, S - 2:].set(1)
    # special-token mask: 1 means attendable; position 0 is a special token
    special_token_mask = jnp.ones((B, 1, S), jnp.int32).at[:, :, 0].set(0)

    params = init_params(k_par, D)

    out = pointer_generator_network(
        encoder_out, decoder_out, vocab_dist, decoder_in,
        src_ext, max_oov_len, params, padding_mask, special_token_mask)
    out = jax.block_until_ready(out)

    ref = reference_forward(
        encoder_out, decoder_out, vocab_dist, decoder_in,
        src_ext, max_oov_len, params, padding_mask, special_token_mask)
    ref = jax.block_until_ready(ref)

    assert out.shape == (B, T, D + max_oov_len)
    # bf16 activation/vocab streams + bf16 MXU vs. f32 reference -> loose tol
    assert jnp.allclose(out, ref, rtol=2e-2, atol=2e-2), (
        float(jnp.max(jnp.abs(out - ref))))

    print("KERNEL_OK")
</pallas_src>

<mosaic_0001>
module attributes {stable_mosaic.version = 11 : i64} {
  func.func @kernel(%arg0: i32, %arg1: i32, %arg2: memref<2x8x32xbf16, #tpu.memory_space<vmem>>, %arg3: memref<2x8x32xbf16, #tpu.memory_space<vmem>>, %arg4: memref<2x8x32xbf16, #tpu.memory_space<vmem>>, %arg5: memref<2x8x128xbf16, #tpu.memory_space<vmem>>, %arg6: memref<2x8x1xi32, #tpu.memory_space<vmem>>, %arg7: memref<2x1x8xi32, #tpu.memory_space<vmem>>, %arg8: memref<32x32xbf16, #tpu.memory_space<vmem>>, %arg9: memref<1x32xf32, #tpu.memory_space<vmem>>, %arg10: memref<32x32xbf16, #tpu.memory_space<vmem>>, %arg11: memref<1x32xf32, #tpu.memory_space<vmem>>, %arg12: memref<32x32xbf16, #tpu.memory_space<vmem>>, %arg13: memref<1x32xf32, #tpu.memory_space<vmem>>, %arg14: memref<32x32xbf16, #tpu.memory_space<vmem>>, %arg15: memref<1x32xf32, #tpu.memory_space<vmem>>, %arg16: memref<3x32xf32, #tpu.memory_space<vmem>>, %arg17: memref<1x1xf32, #tpu.memory_space<vmem>>, %arg18: memref<2x8x128xf32, #tpu.memory_space<vmem>>, %arg19: memref<2x8x8xbf16, #tpu.memory_space<vmem>>, %arg20: memref<2x8x1xf32, #tpu.memory_space<vmem>>) attributes {dimension_semantics = [#tpu.dimension_semantics<parallel>, #tpu.dimension_semantics<arbitrary>], iteration_bounds = array<i64: 1, 1>, scalar_prefetch = 0 : i64, scratch_operands = 2 : i64, tpu.core_type = #tpu.core_type<tc>, window_params = [{transform_indices = @transform_0, window_bounds = array<i64: 2, 8, 32>}, {transform_indices = @transform_1, window_bounds = array<i64: 2, 8, 32>}, {transform_indices = @transform_2, window_bounds = array<i64: 2, 8, 32>}, {transform_indices = @transform_3, window_bounds = array<i64: 2, 8, 128>}, {transform_indices = @transform_4, window_bounds = array<i64: 2, 8, 1>}, {transform_indices = @transform_5, window_bounds = array<i64: 2, 1, 8>}, {pipeline_mode = #tpu.pipeline_mode<synchronous>, transform_indices = @transform_6, window_bounds = array<i64: 32, 32>}, {pipeline_mode = #tpu.pipeline_mode<synchronous>, transform_indices = @transform_7, window_bounds = array<i64: 1, 32>}, {pipeline_mode = #tpu.pipeline_mode<synchronous>, transform_indices = @transform_8, window_bounds = array<i64: 32, 32>}, {pipeline_mode = #tpu.pipeline_mode<synchronous>, transform_indices = @transform_9, window_bounds = array<i64: 1, 32>}, {pipeline_mode = #tpu.pipeline_mode<synchronous>, transform_indices = @transform_10, window_bounds = array<i64: 32, 32>}, {pipeline_mode = #tpu.pipeline_mode<synchronous>, transform_indices = @transform_11, window_bounds = array<i64: 1, 32>}, {pipeline_mode = #tpu.pipeline_mode<synchronous>, transform_indices = @transform_12, window_bounds = array<i64: 32, 32>}, {pipeline_mode = #tpu.pipeline_mode<synchronous>, transform_indices = @transform_13, window_bounds = array<i64: 1, 32>}, {pipeline_mode = #tpu.pipeline_mode<synchronous>, transform_indices = @transform_14, window_bounds = array<i64: 3, 32>}, {pipeline_mode = #tpu.pipeline_mode<synchronous>, transform_indices = @transform_15, window_bounds = array<i64: 1, 1>}, {transform_indices = @transform_16, window_bounds = array<i64: 2, 8, 128>}]} {
    %c0_i32 = arith.constant 0 : i32
    %0 = arith.cmpi eq, %arg1, %c0_i32 : i32
    %1 = arith.extui %0 : i1 to i32
    %c0_i32_0 = arith.constant 0 : i32
    %2 = arith.cmpi ne, %1, %c0_i32_0 : i32
    scf.if %2 {
      %c0_15 = arith.constant 0 : index
      %c0_16 = arith.constant 0 : index
      %c0_17 = arith.constant 0 : index
      %22 = vector.load %arg2[%c0_15, %c0_16, %c0_17] : memref<2x8x32xbf16, #tpu.memory_space<vmem>>, vector<2x8x32xbf16>
      %23 = vector.shape_cast %22 : vector<2x8x32xbf16> to vector<16x32xbf16>
      %c0_18 = arith.constant 0 : index
      %c0_19 = arith.constant 0 : index
      %24 = vector.load %arg10[%c0_18, %c0_19] : memref<32x32xbf16, #tpu.memory_space<vmem>>, vector<32x32xbf16>
      %cst_20 = arith.constant dense<0.000000e+00> : vector<16x32xf32>
      %25 = tpu.matmul %23, %24, %cst_20 {dimension_numbers = #tpu.dot_dimension_numbers<[1], [0], [0], [1], [0, 0, 1, 1], [], []>} : vector<16x32xbf16>, vector<32x32xbf16>, vector<16x32xf32> -> vector<16x32xf32>
      %c0_21 = arith.constant 0 : index
      %c0_22 = arith.constant 0 : index
      %26 = vector.load %arg11[%c0_21, %c0_22] : memref<1x32xf32, #tpu.memory_space<vmem>>, vector<1x32xf32>
      %27 = vector.broadcast %26 : vector<1x32xf32> to vector<16x32xf32>
      %28 = arith.addf %25, %27 : vector<16x32xf32>
      %c0_23 = arith.constant 0 : index
      %c0_24 = arith.constant 0 : index
      %29 = vector.load %arg12[%c0_23, %c0_24] : memref<32x32xbf16, #tpu.memory_space<vmem>>, vector<32x32xbf16>
      %cst_25 = arith.constant dense<0.000000e+00> : vector<16x32xf32>
      %30 = tpu.matmul %23, %29, %cst_25 {dimension_numbers = #tpu.dot_dimension_numbers<[1], [0], [0], [1], [0, 0, 1, 1], [], []>} : vector<16x32xbf16>, vector<32x32xbf16>, vector<16x32xf32> -> vector<16x32xf32>
      %c0_26 = arith.constant 0 : index
      %c0_27 = arith.constant 0 : index
      %31 = vector.load %arg13[%c0_26, %c0_27] : memref<1x32xf32, #tpu.memory_space<vmem>>, vector<1x32xf32>
      %32 = vector.broadcast %31 : vector<1x32xf32> to vector<16x32xf32>
      %33 = arith.addf %30, %32 : vector<16x32xf32>
      %34 = vector.shape_cast %28 : vector<16x32xf32> to vector<2x8x32xf32>
      %35 = arith.truncf %34 : vector<2x8x32xf32> to vector<2x8x32xbf16>
      %36 = vector.shape_cast %33 : vector<16x32xf32> to vector<2x8x32xf32>
      %37 = arith.truncf %36 : vector<2x8x32xf32> to vector<2x8x32xbf16>
      %c0_28 = arith.constant 0 : index
      %c0_29 = arith.constant 0 : index
      %c0_30 = arith.constant 0 : index
      %38 = vector.load %arg7[%c0_28, %c0_29, %c0_30] : memref<2x1x8xi32, #tpu.memory_space<vmem>>, vector<2x1x8xi32>
      %c0_i32_31 = arith.constant 0 : i32
      %39 = vector.broadcast %c0_i32_31 : i32 to vector<2x1x8xi32>
      %40 = arith.cmpi ne, %38, %39 : vector<2x1x8xi32>
      %c0_32 = arith.constant 0 : index
      %c0_33 = arith.constant 0 : index
      %41 = vector.load %arg16[%c0_32, %c0_33] : memref<3x32xf32, #tpu.memory_space<vmem>>, vector<3x32xf32>
      %c0_34 = arith.constant 0 : index
      %c0_35 = arith.constant 0 : index
      %c0_36 = arith.constant 0 : index
      %42 = vector.load %arg3[%c0_34, %c0_35, %c0_36] : memref<2x8x32xbf16, #tpu.memory_space<vmem>>, vector<2x8x32xbf16>
      %c0_37 = arith.constant 0 : index
      %c0_38 = arith.constant 0 : index
      %c0_39 = arith.constant 0 : index
      %43 = vector.load %arg4[%c0_37, %c0_38, %c0_39] : memref<2x8x32xbf16, #tpu.memory_space<vmem>>, vector<2x8x32xbf16>
      %44 = vector.shape_cast %42 : vector<2x8x32xbf16> to vector<16x32xbf16>
      %45 = vector.shape_cast %43 : vector<2x8x32xbf16> to vector<16x32xbf16>
      %c0_40 = arith.constant 0 : index
      %c0_41 = arith.constant 0 : index
      %46 = vector.load %arg8[%c0_40, %c0_41] : memref<32x32xbf16, #tpu.memory_space<vmem>>, vector<32x32xbf16>
      %cst_42 = arith.constant dense<0.000000e+00> : vector<16x32xf32>
      %47 = tpu.matmul %44, %46, %cst_42 {dimension_numbers = #tpu.dot_dimension_numbers<[1], [0], [0], [1], [0, 0, 1, 1], [], []>} : vector<16x32xbf16>, vector<32x32xbf16>, vector<16x32xf32> -> vector<16x32xf32>
      %c0_43 = arith.constant 0 : index
      %c0_44 = arith.constant 0 : index
      %48 = vector.load %arg9[%c0_43, %c0_44] : memref<1x32xf32, #tpu.memory_space<vmem>>, vector<1x32xf32>
      %49 = vector.broadcast %48 : vector<1x32xf32> to vector<16x32xf32>
      %50 = arith.addf %47, %49 : vector<16x32xf32>
      %51 = vector.shape_cast %50 : vector<16x32xf32> to vector<2x8x32xf32>
      %52 = arith.truncf %51 : vector<2x8x32xf32> to vector<2x8x32xbf16>
      "tpu.trace_start"() <{level = 10 : i32, message = "bte,bse->bts"}> : () -> ()
      %cst_45 = arith.constant dense<0.000000e+00> : vector<2x8x8xf32>
      %53 = tpu.matmul %52, %35, %cst_45 {dimension_numbers = #tpu.dot_dimension_numbers<[2], [2], [1], [1], [0, 0, 0, 1, 1, 1], [0], [0]>} : vector<2x8x32xbf16>, vector<2x8x32xbf16>, vector<2x8x8xf32> -> vector<2x8x8xf32>
      "tpu.trace_stop"() : () -> ()
      %cst_46 = arith.constant dense<0xFF800000> : vector<2x8xf32>
      %54 = vector.multi_reduction <maximumf>, %53, %cst_46 [2] : vector<2x8x8xf32> to vector<2x8xf32>
      %55 = vector.shape_cast %54 : vector<2x8xf32> to vector<2x8x1xf32>
      %56 = vector.broadcast %55 : vector<2x8x1xf32> to vector<2x8x8xf32>
      %57 = arith.subf %53, %56 : vector<2x8x8xf32>
      %58 = math.exp %57 : vector<2x8x8xf32>
      %cst_47 = arith.constant 0.000000e+00 : f32
      %59 = vector.shape_cast %40 : vector<2x1x8xi1> to vector<2x1x8xi1>
      %60 = vector.broadcast %59 : vector<2x1x8xi1> to vector<2x8x8xi1>
      %61 = vector.broadcast %cst_47 : f32 to vector<2x8x8xf32>
      %62 = arith.select %60, %61, %58 : vector<2x8x8xi1>, vector<2x8x8xf32>
      %cst_48 = arith.constant dense<0.000000e+00> : vector<2x8xf32>
      %63 = vector.multi_reduction <add>, %62, %cst_48 [2] : vector<2x8x8xf32> to vector<2x8xf32>
      %64 = vector.shape_cast %63 : vector<2x8xf32> to vector<2x8x1xf32>
      %cst_49 = arith.constant 1.000000e-30 : f32
      %65 = vector.broadcast %cst_49 : f32 to vector<2x8x1xf32>
      %66 = arith.maximumf %64, %65 : vector<2x8x1xf32>
      %67 = tpu.reciprocal %66 {approx = true} : vector<2x8x1xf32> -> vector<2x8x1xf32>
      %68 = vector.broadcast %67 : vector<2x8x1xf32> to vector<2x8x8xf32>
      %69 = arith.mulf %62, %68 : vector<2x8x8xf32>
      %70 = arith.truncf %69 : vector<2x8x8xf32> to vector<2x8x8xbf16>
      "tpu.trace_start"() <{level = 10 : i32, message = "bts,bse->bte"}> : () -> ()
      %cst_50 = arith.constant dense<0.000000e+00> : vector<2x8x32xf32>
      %71 = tpu.matmul %70, %37, %cst_50 {dimension_numbers = #tpu.dot_dimension_numbers<[2], [1], [1], [2], [0, 0, 0, 1, 1, 2], [0], [0]>} : vector<2x8x8xbf16>, vector<2x8x32xbf16>, vector<2x8x32xf32> -> vector<2x8x32xf32>
      "tpu.trace_stop"() : () -> ()
      %72 = vector.shape_cast %71 : vector<2x8x32xf32> to vector<16x32xf32>
      %73 = arith.truncf %72 : vector<16x32xf32> to vector<16x32xbf16>
      %c0_51 = arith.constant 0 : index
      %c0_52 = arith.constant 0 : index
      %74 = vector.load %arg14[%c0_51, %c0_52] : memref<32x32xbf16, #tpu.memory_space<vmem>>, vector<32x32xbf16>
      %cst_53 = arith.constant dense<0.000000e+00> : vector<16x32xf32>
      %75 = tpu.matmul %73, %74, %cst_53 {dimension_numbers = #tpu.dot_dimension_numbers<[1], [0], [0], [1], [0, 0, 1, 1], [], []>} : vector<16x32xbf16>, vector<32x32xbf16>, vector<16x32xf32> -> vector<16x32xf32>
      %c0_54 = arith.constant 0 : index
      %c0_55 = arith.constant 0 : index
      %76 = vector.load %arg15[%c0_54, %c0_55] : memref<1x32xf32, #tpu.memory_space<vmem>>, vector<1x32xf32>
      %77 = vector.broadcast %76 : vector<1x32xf32> to vector<16x32xf32>
      %78 = arith.addf %75, %77 : vector<16x32xf32>
      %79 = vector.extract_strided_slice %41 {offsets = [0, 0], sizes = [1, 32], strides = [1, 1]} : vector<3x32xf32> to vector<1x32xf32>
      %80 = vector.broadcast %79 : vector<1x32xf32> to vector<16x32xf32>
      %81 = arith.mulf %78, %80 : vector<16x32xf32>
      %82 = vector.extract_strided_slice %41 {offsets = [1, 0], sizes = [1, 32], strides = [1, 1]} : vector<3x32xf32> to vector<1x32xf32>
      %83 = arith.extf %44 : vector<16x32xbf16> to vector<16x32xf32>
      %84 = vector.broadcast %82 : vector<1x32xf32> to vector<16x32xf32>
      %85 = arith.mulf %83, %84 : vector<16x32xf32>
      %86 = arith.addf %81, %85 : vector<16x32xf32>
      %87 = vector.extract_strided_slice %41 {offsets = [2, 0], sizes = [1, 32], strides = [1, 1]} : vector<3x32xf32> to vector<1x32xf32>
      %88 = arith.extf %45 : vector<16x32xbf16> to vector<16x32xf32>
      %89 = vector.broadcast %87 : vector<1x32xf32> to vector<16x32xf32>
      %90 = arith.mulf %88, %89 : vector<16x32xf32>
      %91 = arith.addf %86, %90 : vector<16x32xf32>
      %cst_56 = arith.constant dense<0.000000e+00> : vector<16xf32>
      %92 = vector.multi_reduction <add>, %91, %cst_56 [1] : vector<16x32xf32> to vector<16xf32>
      %93 = vector.shape_cast %92 : vector<16xf32> to vector<16x1xf32>
      %c0_57 = arith.constant 0 : index
      %c0_58 = arith.constant 0 : index
      %94 = vector.load %arg17[%c0_57, %c0_58] : memref<1x1xf32, #tpu.memory_space<vmem>>, vector<1x1xf32>
      %95 = vector.broadcast %94 : vector<1x1xf32> to vector<16x1xf32>
      %96 = arith.addf %93, %95 : vector<16x1xf32>
      %97 = arith.negf %96 : vector<16x1xf32>
      %98 = math.exp %97 : vector<16x1xf32>
      %cst_59 = arith.constant 1.000000e+00 : f32
      %99 = vector.broadcast %cst_59 : f32 to vector<16x1xf32>
      %100 = arith.addf %99, %98 : vector<16x1xf32>
      %101 = arith.divf %99, %100 : vector<16x1xf32>
      %102 = vector.shape_cast %101 : vector<16x1xf32> to vector<2x8x1xf32>
      %c0_60 = arith.constant 0 : index
      %c0_61 = arith.constant 0 : index
      %c0_62 = arith.constant 0 : index
      %103 = vector.load %arg20[%c0_60, %c0_61, %c0_62] : memref<2x8x1xf32, #tpu.memory_space<vmem>>, vector<2x8x1xf32>
      tpu.vector_store %arg20[%c0_60, %c0_61, %c0_62], %102 {strides = array<i32>} : memref<2x8x1xf32, #tpu.memory_space<vmem>>, vector<2x8x1xf32>,
      %cst_63 = arith.constant 1.000000e+00 : f32
      %104 = vector.broadcast %cst_63 : f32 to vector<2x8x1xf32>
      %105 = arith.subf %104, %102 : vector<2x8x1xf32>
      %106 = vector.broadcast %105 : vector<2x8x1xf32> to vector<2x8x8xf32>
      %107 = arith.mulf %106, %69 : vector<2x8x8xf32>
      %108 = arith.truncf %107 : vector<2x8x8xf32> to vector<2x8x8xbf16>
      %c0_64 = arith.constant 0 : index
      %c0_65 = arith.constant 0 : index
      %c0_66 = arith.constant 0 : index
      %109 = vector.load %arg19[%c0_64, %c0_65, %c0_66] : memref<2x8x8xbf16, #tpu.memory_space<vmem>>, vector<2x8x8xbf16>
      tpu.vector_store %arg19[%c0_64, %c0_65, %c0_66], %108 {strides = array<i32>} : memref<2x8x8xbf16, #tpu.memory_space<vmem>>, vector<2x8x8xbf16>,
    } else {
    }
    %c0 = arith.constant 0 : index
    %c0_1 = arith.constant 0 : index
    %c0_2 = arith.constant 0 : index
    %3 = vector.load %arg6[%c0, %c0_1, %c0_2] : memref<2x8x1xi32, #tpu.memory_space<vmem>>, vector<2x8x1xi32>
    %c128_i32 = arith.constant 128 : i32
    %4 = arith.muli %arg1, %c128_i32 : i32
    %5 = vector.broadcast %4 : i32 to vector<2x8x1xi32>
    %6 = arith.subi %3, %5 : vector<2x8x1xi32>
    %7 = tpu.iota {dimensions = array<i32: 2>} : vector<2x8x128xi32>
    %8 = vector.broadcast %6 : vector<2x8x1xi32> to vector<2x8x128xi32>
    %9 = arith.cmpi eq, %8, %7 : vector<2x8x128xi32>
    %10 = arith.extui %9 : vector<2x8x128xi1> to vector<2x8x128xi32>
    %11 = arith.sitofp %10 : vector<2x8x128xi32> to vector<2x8x128xf32>
    %12 = arith.truncf %11 : vector<2x8x128xf32> to vector<2x8x128xbf16>
    %c0_3 = arith.constant 0 : index
    %c0_4 = arith.constant 0 : index
    %c0_5 = arith.constant 0 : index
    %13 = vector.load %arg19[%c0_3, %c0_4, %c0_5] : memref<2x8x8xbf16, #tpu.memory_space<vmem>>, vector<2x8x8xbf16>
    "tpu.trace_start"() <{level = 10 : i32, message = "bts,bsv->btv"}> : () -> ()
    %cst = arith.constant dense<0.000000e+00> : vector<2x8x128xf32>
    %14 = tpu.matmul %13, %12, %cst {dimension_numbers = #tpu.dot_dimension_numbers<[2], [1], [1], [2], [0, 0, 0, 1, 1, 2], [0], [0]>} : vector<2x8x8xbf16>, vector<2x8x128xbf16>, vector<2x8x128xf32> -> vector<2x8x128xf32>
    "tpu.trace_stop"() : () -> ()
    %c0_6 = arith.constant 0 : index
    %c0_7 = arith.constant 0 : index
    %c0_8 = arith.constant 0 : index
    %15 = vector.load %arg20[%c0_6, %c0_7, %c0_8] : memref<2x8x1xf32, #tpu.memory_space<vmem>>, vector<2x8x1xf32>
    %c0_9 = arith.constant 0 : index
    %c0_10 = arith.constant 0 : index
    %c0_11 = arith.constant 0 : index
    %16 = vector.load %arg5[%c0_9, %c0_10, %c0_11] : memref<2x8x128xbf16, #tpu.memory_space<vmem>>, vector<2x8x128xbf16>
    %17 = arith.extf %16 : vector<2x8x128xbf16> to vector<2x8x128xf32>
    %18 = vector.broadcast %15 : vector<2x8x1xf32> to vector<2x8x128xf32>
    %19 = arith.mulf %18, %17 : vector<2x8x128xf32>
    %20 = arith.addf %19, %14 : vector<2x8x128xf32>
    %c0_12 = arith.constant 0 : index
    %c0_13 = arith.constant 0 : index
    %c0_14 = arith.constant 0 : index
    %21 = vector.load %arg18[%c0_12, %c0_13, %c0_14] : memref<2x8x128xf32, #tpu.memory_space<vmem>>, vector<2x8x128xf32>
    tpu.vector_store %arg18[%c0_12, %c0_13, %c0_14], %20 {strides = array<i32>} : memref<2x8x128xf32, #tpu.memory_space<vmem>>, vector<2x8x128xf32>,
    return
  }
  func.func @transform_0(%arg0: i32, %arg1: i32) -> (i32, i32, i32) {
    %c0_i32 = arith.constant 0 : i32
    %c0_i32_0 = arith.constant 0 : i32
    %c0_i32_1 = arith.constant 0 : i32
    return %arg0, %c0_i32, %c0_i32_0 : i32, i32, i32
  }
  func.func @transform_1(%arg0: i32, %arg1: i32) -> (i32, i32, i32) {
    %c0_i32 = arith.constant 0 : i32
    %c0_i32_0 = arith.constant 0 : i32
    %c0_i32_1 = arith.constant 0 : i32
    return %arg0, %c0_i32, %c0_i32_0 : i32, i32, i32
  }
  func.func @transform_2(%arg0: i32, %arg1: i32) -> (i32, i32, i32) {
    %c0_i32 = arith.constant 0 : i32
    %c0_i32_0 = arith.constant 0 : i32
    %c0_i32_1 = arith.constant 0 : i32
    return %arg0, %c0_i32, %c0_i32_0 : i32, i32, i32
  }
  func.func @transform_3(%arg0: i32, %arg1: i32) -> (i32, i32, i32) {
    %c0_i32 = arith.constant 0 : i32
    %c0_i32_0 = arith.constant 0 : i32
    return %arg0, %c0_i32, %arg1 : i32, i32, i32
  }
  func.func @transform_4(%arg0: i32, %arg1: i32) -> (i32, i32, i32) {
    %c0_i32 = arith.constant 0 : i32
    %c0_i32_0 = arith.constant 0 : i32
    %c0_i32_1 = arith.constant 0 : i32
    return %arg0, %c0_i32, %c0_i32_0 : i32, i32, i32
  }
  func.func @transform_5(%arg0: i32, %arg1: i32) -> (i32, i32, i32) {
    %c0_i32 = arith.constant 0 : i32
    %c0_i32_0 = arith.constant 0 : i32
    %c0_i32_1 = arith.constant 0 : i32
    return %arg0, %c0_i32, %c0_i32_0 : i32, i32, i32
  }
  func.func @transform_6(%arg0: i32, %arg1: i32) -> (i32, i32) {
    %c0_i32 = arith.constant 0 : i32
    %c0_i32_0 = arith.constant 0 : i32
    %c0_i32_1 = arith.constant 0 : i32
    return %c0_i32, %c0_i32_0 : i32, i32
  }
  func.func @transform_7(%arg0: i32, %arg1: i32) -> (i32, i32) {
    %c0_i32 = arith.constant 0 : i32
    %c0_i32_0 = arith.constant 0 : i32
    %c0_i32_1 = arith.constant 0 : i32
    return %c0_i32, %c0_i32_0 : i32, i32
  }
  func.func @transform_8(%arg0: i32, %arg1: i32) -> (i32, i32) {
    %c0_i32 = arith.constant 0 : i32
    %c0_i32_0 = arith.constant 0 : i32
    %c0_i32_1 = arith.constant 0 : i32
    return %c0_i32, %c0_i32_0 : i32, i32
  }
  func.func @transform_9(%arg0: i32, %arg1: i32) -> (i32, i32) {
    %c0_i32 = arith.constant 0 : i32
    %c0_i32_0 = arith.constant 0 : i32
    %c0_i32_1 = arith.constant 0 : i32
    return %c0_i32, %c0_i32_0 : i32, i32
  }
  func.func @transform_10(%arg0: i32, %arg1: i32) -> (i32, i32) {
    %c0_i32 = arith.constant 0 : i32
    %c0_i32_0 = arith.constant 0 : i32
    %c0_i32_1 = arith.constant 0 : i32
    return %c0_i32, %c0_i32_0 : i32, i32
  }
  func.func @transform_11(%arg0: i32, %arg1: i32) -> (i32, i32) {
    %c0_i32 = arith.constant 0 : i32
    %c0_i32_0 = arith.constant 0 : i32
    %c0_i32_1 = arith.constant 0 : i32
    return %c0_i32, %c0_i32_0 : i32, i32
  }
  func.func @transform_12(%arg0: i32, %arg1: i32) -> (i32, i32) {
    %c0_i32 = arith.constant 0 : i32
    %c0_i32_0 = arith.constant 0 : i32
    %c0_i32_1 = arith.constant 0 : i32
    return %c0_i32, %c0_i32_0 : i32, i32
  }
  func.func @transform_13(%arg0: i32, %arg1: i32) -> (i32, i32) {
    %c0_i32 = arith.constant 0 : i32
    %c0_i32_0 = arith.constant 0 : i32
    %c0_i32_1 = arith.constant 0 : i32
    return %c0_i32, %c0_i32_0 : i32, i32
  }
  func.func @transform_14(%arg0: i32, %arg1: i32) -> (i32, i32) {
    %c0_i32 = arith.constant 0 : i32
    %c0_i32_0 = arith.constant 0 : i32
    %c0_i32_1 = arith.constant 0 : i32
    return %c0_i32, %c0_i32_0 : i32, i32
  }
  func.func @transform_15(%arg0: i32, %arg1: i32) -> (i32, i32) {
    %c0_i32 = arith.constant 0 : i32
    %c0_i32_0 = arith.constant 0 : i32
    %c0_i32_1 = arith.constant 0 : i32
    return %c0_i32, %c0_i32_0 : i32, i32
  }
  func.func @transform_16(%arg0: i32, %arg1: i32) -> (i32, i32, i32) {
    %c0_i32 = arith.constant 0 : i32
    %c0_i32_0 = arith.constant 0 : i32
    return %arg0, %c0_i32, %arg1 : i32, i32, i32
  }
}

</mosaic_0001>

<bundles_post_ra>
// kernel: tpu_custom_call.1
= control target key start
LH: loop header
LB: loop body
LE: loop exit
PB: predicated region body
PF: predicated region fallthrough
CT: control target
= control target key end

     0   :  { %s1179_s0 = inlined_call_operand.hbm [shape: bf16[2,8,32], index: 0, kind: input, shape index: {}]   ;;  %s1180_s1 = inlined_call_operand.hbm [shape: bf16[2,8,32], index: 1, kind: input, shape index: {}]   ;;  %s1181_s2 = inlined_call_operand.hbm [shape: bf16[2,8,32], index: 2, kind: input, shape index: {}]   ;;  %s1182_s3 = inlined_call_operand.hbm [shape: bf16[2,8,128], index: 3, kind: input, shape index: {}]   ;;  %s1183_s4 = inlined_call_operand.vmem [shape: s32[2,8,1], index: 4, kind: input, shape index: {}]   ;;  %s1184_s5 = inlined_call_operand.vmem [shape: s32[2,1,8], index: 5, kind: input, shape index: {}]   ;;  %s1185_s6 = inlined_call_operand.vmem [shape: bf16[32,32], index: 6, kind: input, shape index: {}]   ;;  %s1186_s7 = inlined_call_operand.vmem [shape: f32[1,32], index: 7, kind: input, shape index: {}]   ;;  %s1187_s8 = inlined_call_operand.hbm [shape: bf16[32,32], index: 8, kind: input, shape index: {}]   ;;  %s1188_s9 = inlined_call_operand.vmem [shape: f32[1,32], index: 9, kind: input, shape index: {}]   ;;  %s1189_s10 = inlined_call_operand.hbm [shape: bf16[32,32], index: 10, kind: input, shape index: {}]   ;;  %s1190_s11 = inlined_call_operand.vmem [shape: f32[1,32], index: 11, kind: input, shape index: {}]   ;;  %s1191_s12 = inlined_call_operand.hbm [shape: bf16[32,32], index: 12, kind: input, shape index: {}]   ;;  %s1192_s13 = inlined_call_operand.vmem [shape: f32[1,32], index: 13, kind: input, shape index: {}]   ;;  %s1193_s14 = inlined_call_operand.vmem [shape: f32[3,32], index: 14, kind: input, shape index: {}]   ;;  %s1194_s15 = inlined_call_operand.<no memory space> [shape: f32[1,1], index: 15, kind: input, shape index: {}]   ;;  %s1195_s16 = inlined_call_operand.hbm [shape: f32[2,8,128], index: 16, kind: output, shape index: {}]  }
   0x1   :  { %1196 = sst [smem:[#allocation23_spill]] %s1179_s0  ;;  %v21_v0 = vstv %s1194_s15 }
   0x2   :  { %22 = vst [vmem:[#allocation4] sm:$0x1] %v21_v0 }
   0x3   :  { %23 = vsyncpa [#allocation6], 0 }
   0x4   :  { %24 = vsyncpa [#allocation9], 0 }
   0x5   :  { %25 = vsyncpa [#allocation12], 0 }
   0x6   :  { %26 = vsyncpa [#allocation15], 0 }
   0x7   :  { %27 = vsyncpa [#allocation7], 0  ;;  %s45_s25 = sshll.u32 %s1180_s1, 4  ;;  %s965_s26 = smov [#allocation8]   ;;  %s46_s25 = int_to_ptr.hbm [resolvable:$true] %s45_s25 }
   0x8   :  { %s47_s27 = sshll.u32 %s965_s26, 4  ;;  %s71_s30 = sshll.u32 %s1182_s3, 4  ;;  %s48_s27 = int_to_ptr.vmem [resolvable:$true] %s47_s27  ;;  %s72_s30 = int_to_ptr.hbm [resolvable:$true] %s71_s30 }
   0x9   :  { %s966_s0 = smov 64   ;;  %s967_s15 = smov 4  }
   0xa   :  { %53 = dma.hbm_to_vmem [thread:$0]  %s46_s25, 128, %s48_s27, [#allocation9], %s966_s0, %s966_s0, %s967_s15  }
   0xb   :  { %s968_s17 = smov [#allocation11]   ;;  %s107_s1 = sshll.u32 %s1189_s10, 4  ;;  %s108_s1 = int_to_ptr.hbm [resolvable:$true] %s107_s1 }
   0xc   :  { %s73_s18 = sshll.u32 %s968_s17, 4  ;;  %s1197_s22 = sld [smem:[#allocation23_spill]]  ;;  %s74_s18 = int_to_ptr.vmem [resolvable:$true] %s73_s18 }
   0xd   :  { %79 = dma.hbm_to_vmem [thread:$0]  %s72_s30, 128, %s74_s18, [#allocation12], %s966_s0, %s966_s0, %s967_s15  }
   0xe   :  { %s969_s24 = smov [#allocation14]   ;;  %s970_s25 = smov [#allocation5]  }
   0xf   :  { %s109_s26 = sshll.u32 %s969_s24, 4  ;;  %s34_s10 = sshll.u32 %s970_s25, 4  ;;  %s110_s26 = int_to_ptr.vmem [resolvable:$true] %s109_s26  ;;  %s35_s10 = int_to_ptr.vmem [resolvable:$true] %s34_s10 }
  0x10   :  { %115 = dma.hbm_to_vmem [thread:$0]  %s108_s1, 256, %s110_s26, [#allocation15], %s966_s0, %s966_s0, %s967_s15  }
  0x11   :  { %s58_s29 = sshll.u32 %s1181_s2, 4  ;;  %s92_s18 = sshll.u32 %s1187_s8, 4  ;;  %s59_s29 = int_to_ptr.hbm [resolvable:$true] %s58_s29  ;;  %s93_s18 = int_to_ptr.hbm [resolvable:$true] %s92_s18 }
  0x12   :  { %s32_s23 = sshll.u32 %s1197_s22, 4  ;;  %s971_s19 = smov [#allocation10]   ;;  %s33_s23 = int_to_ptr.hbm [resolvable:$true] %s32_s23 }
  0x13   :  { %40 = dma.hbm_to_vmem [thread:$0]  %s33_s23, 128, %s35_s10, [#allocation6], %s966_s0, %s966_s0, %s967_s15  }
  0x14   :  { %s60_s20 = sshll.u32 %s971_s19, 4  ;;  %s972_s1 = smov [#allocation13]   ;;  %s61_s20 = int_to_ptr.vmem [resolvable:$true] %s60_s20 }
  0x15   :  { %66 = dma.hbm_to_vmem [thread:$0]  %s59_s29, 128, %s61_s20, [#allocation9], %s966_s0, %s966_s0, %s967_s15  }
  0x16   :  { %s94_s2 = sshll.u32 %s972_s1, 4  ;;  %s122_s22 = sshll.u32 %s1191_s12, 4  ;;  %s95_s2 = int_to_ptr.vmem [resolvable:$true] %s94_s2  ;;  %s123_s22 = int_to_ptr.hbm [resolvable:$true] %s122_s22 }
  0x17   :  { %100 = dma.hbm_to_vmem [thread:$0]  %s93_s18, 256, %s95_s2, [#allocation12], %s966_s0, %s966_s0, %s967_s15  }
  0x18   :  { %s973_s8 = smov [#allocation16]  }
  0x19   :  { %s124_s23 = sshll.u32 %s973_s8, 4  ;;  %s125_s23 = int_to_ptr.vmem [resolvable:$true] %s124_s23 }
  0x1a   :  { %130 = dma.hbm_to_vmem [thread:$0]  %s123_s22, 256, %s125_s23, [#allocation15], %s966_s0, %s966_s0, %s967_s15  }
  0x1b   :  { %955 = dma.done.wait [#allocation6], 128  }
  0x1c   :  { %956 = vsyncadd [#allocation6], 4294967168 }
  0x1d   :  { %957 = dma.done.wait [#allocation9], 256  }
  0x1e   :  { %958 = vsyncadd [#allocation9], 4294967040 }
  0x1f   :  { %959 = dma.done.wait [#allocation12], 384  }
  0x20   :  { %960 = vsyncadd [#allocation12], 4294966912 }
  0x21   :  { %961 = dma.done.wait [#allocation15], 512  }
  0x22   :  { %962 = vsyncadd [#allocation15], 4294966784  ;;  %v709_v1 = vld [vmem:[#allocation13 + $0x8] sm:$0xff]  ;;  %v708_v3 = vld [vmem:[#allocation13] sm:$0xff]  ;;  %vm197_vm0 = vcmask 261120   ;;  %vm344_vm1 = vcmask 64512  }
  0x23   :  { %v714_v2 = vld [vmem:[%s1185_s6 + $0x8] sm:$0xff]  ;;  %207 = vmatpush.bf16.msra.mxu0 %v709_v1  ;;  %v713_v4 = vld [vmem:[%s1185_s6] sm:$0xff]  ;;  %v711_v23 = vld [vmem:[#allocation14 + $0x8] sm:$0xff]  ;;  %v974_v31 = vmov 0   ;;  %vm382_vm6 = vcmask 1043456   ;;  %vm523_vm10 = vcmask 7168  }
  0x24   :  { %296 = vmatpush.bf16.msra.mxu2 %v714_v2  ;;  %v707_v5 = vld [vmem:[#allocation5] sm:$0xff]  ;;  %v712_v6 = vld [vmem:[#allocation8] sm:$0xff]  ;;  %241 = vmatpush.bf16.msra.mxu1 %v711_v23  ;;  %v710_v24 = vld [vmem:[#allocation14] sm:$0xff]  ;;  %s637_s21 = sshll.u32 %s1195_s16, 4  ;;  %s977_s22 = smov 128   ;;  %s638_s21 = int_to_ptr.hbm [resolvable:$true] %s637_s21 }
  0x25   :  { %v742_v7 = vld [vmem:[%s1188_s9] ss:$0 sm:$0xff]  ;;  %741 = vset.pattern.permute.xlu2 %v974_v31  ;;  %739 = vset.pattern.permute.xlu0 %v974_v31  ;;  %v254_v32 = vld [vmem:[%s1184_s5 + $0x1] sm:$0x1]  ;;  %s978_s8 = smov 8  }
  0x26   :  { %v743_v11 = vld [vmem:[%s1186_s7] ss:$0 sm:$0xff]  ;;  %740 = vset.pattern.permute.xlu1 %v974_v31  ;;  %vm256_vm2 = vcmp.ne.s32.totalorder %v254_v32, 0  ;;  %v716_v59 = vld [vmem:[#allocation16 + $0x8] sm:$0xff] }
  0x27   :  { %208 = vmatpush.bf16.msra.mxu0 %v708_v3  ;;  %v358_v35 = vsel %vm256_vm2, 1, %v974_v31  ;;  %v253_v37 = vld [vmem:[%s1184_s5] sm:$0x1] }
  0x28   :  { %297 = vmatpush.bf16.msra.mxu2 %v713_v4  ;;  %242 = vmatpush.bf16.msra.mxu1 %v710_v24  ;;  %v360_v38 = vperm.slane %v358_v35, 0  ;;  %vm255_vm3 = vcmp.ne.s32.totalorder %v253_v37, 0  ;;  %v744_v51 = vld [vmem:[%s1190_s11] ss:$0 sm:$0xff] }
  0x29   :  { %v357_v41 = vsel %vm255_vm3, 1, %v974_v31  ;;  %vm542_vm3 = vcmask 60416  }
  0x2a   :  { %665 = vmatmul.msk.bf16.vlgmr.msra.gmra.mxu0 %vm197_vm0, %v707_v5  ;;  %vm362_vm4 = vcmp.eq.s32.totalorder %v360_v38, 1  ;;  %v359_v46 = vperm.slane %v357_v41, 0 }
  0x2b   :  { %687 = vmatmul.msk.bf16.vlgmr.msra.gmra.mxu2 %vm197_vm0, %v712_v6  ;;  %674 = vmatmul.msk.bf16.vlgmr.msra.gmra.mxu1 %vm197_vm0, %v707_v5  ;;  %v715_v6 = vld [vmem:[#allocation16] sm:$0xff] }
  0x2c   :  { %vm361_vm5 = vcmp.eq.s32.totalorder %v359_v46, 1 }
  0xa7   :  { %v210_v8 = vpop.f32.mrf.mxu0 }
  0xa8   :  { %v211_v9 = vadd.f32 %v742_v7, %v210_v8  ;;  %v244_v50 = vpop.f32.mrf.mxu1 }
  0xa9   :  { %v245_v53 = vadd.f32 %v744_v51, %v244_v50 }
  0xaa   :  { %v249_v10 = vpack.c.bf16 %v211_v9, %v211_v9 }
  0xab   :  { %v251_v55 = vpack.c.bf16 %v245_v53, %v245_v53 }
  0xac   :  { %v310_v12 = vsel %vm197_vm0, %v249_v10, 0 }
  0xad   :  { %319 = vmatpush.bf16.xpose.msra.mxu3 %v310_v12  ;;  %v384_v57 = vsel %vm382_vm6, %v251_v55, 0  ;;  %v257_v12 = vld [vmem:[%s1193_s14] sm:$0x7] }
  0xae   :  { %v299_v13 = vpop.f32.mrf.mxu2  ;;  %393 = vmatpush.bf16.msrb.mxu1 %v384_v57 }
  0xaf   :  { %v300_v14 = vadd.f32 %v743_v11, %v299_v13  ;;  %v212_v15 = vpop.f32.mrf.mxu0  ;;  %v258_v13 = vld [vmem:[#allocation8] sm:$0xff]  }
  0xb0   :  { %v213_v16 = vadd.f32 %v742_v7, %v212_v15  ;;  %v246_v52 = vpop.f32.mrf.mxu1  ;;  %v745_v15 = vld [vmem:[%s1192_s13] ss:$0 sm:$0xff] }
  0xb1   :  { %v304_v17 = vpack.c.bf16 %v300_v14, %v300_v14  ;;  %v247_v54 = vadd.f32 %v744_v51, %v246_v52  ;;  %v718_v14 = vld [vmem:[#allocation10] sm:$0xff]  }
  0xb2   :  { %v250_v18 = vpack.c.bf16 %v213_v16, %v213_v16  ;;  %v459_v16 = vunpack.c.l.bf16 %v258_v13 }
  0xb3   :  { %v252_v56 = vpack.c.bf16 %v247_v54, %v247_v54 }
  0xb4   :  { %688 = vmatmul.msk.bf16.vlgmr.msra.gmra.mxu3 %vm197_vm0, %v304_v17  ;;  %v329_v19 = vsel %vm197_vm0, %v250_v18, 0  ;;  %v461_v17 = vperm.slane %v257_v12, 1  ;;  %v456_v18 = vperm.slane %v257_v12, 0 }
  0xb5   :  { %338 = vmatpush.bf16.xpose.msrb.mxu0 %v329_v19  ;;  %v403_v58 = vsel %vm382_vm6, %v252_v56, 0  ;;  %448 = vmatpush.bf16.msrb.mxu3 %v716_v59  ;;  %v719_v19 = vunpack.c.l.bf16 %v718_v14 }
  0xb6   :  { %v301_v20 = vpop.f32.mrf.mxu2  ;;  %412 = vmatpush.bf16.msrb.mxu2 %v403_v58  ;;  %v462_v23 = vmul.f32 %v461_v17, %v459_v16 }
  0xb7   :  { %v302_v21 = vadd.f32 %v743_v11, %v301_v20  ;;  %v468_v20 = vperm.slane %v257_v12, 2 }
  0xb9   :  { %v305_v22 = vpack.c.bf16 %v302_v21, %v302_v21  ;;  %449 = vmatpush.bf16.msrb.mxu3 %v715_v6 }
  0xbc   :  { %689 = vmatmul.msk.bf16.vlgmr.msrb.gmra.mxu0 %vm197_vm0, %v305_v22 }
 0x137   :  { %v321_v25 = vpop.f32.mrf.mxu3 }
 0x138   :  { %v345_v30 = vsel %vm344_vm1, %v321_v25, -inf }
 0x139   :  { %v340_v26 = vpop.f32.mrf.mxu0 }
 0x13a   :  { %v348_v27 = vsel %vm344_vm1, %v340_v26, -inf }
 0x13b   :  { %349 = vmax.xlane.f32.xlu0 %v348_v27  ;;  %v460_v27 = vunpack.c.h.bf16 %v258_v13 }
 0x13f   :  { %v323_v28 = vpop.f32.mrf.mxu3 }
 0x141   :  { %v342_v29 = vpop.f32.mrf.mxu0 }
 0x142   :  { %v720_v29 = vunpack.c.h.bf16 %v718_v14 }
 0x143   :  { %346 = vmax.xlane.f32.xlu0 %v345_v30 }
 0x144   :  { %v470_v35 = vmul.f32 %v720_v29, %v468_v20 }
 0x1ae   :  { %v350_v33 = vpop.xlane.xlu0 %349 }
 0x1af   :  { %v352_v34 = vsub.f32 %v340_v26, %v350_v33  ;;  %v463_v33 = vmul.f32 %v461_v17, %v460_v27 }
 0x1b1   :  { %v355_v36 = vmul.f32 1.442695, %v352_v34 }
 0x1b3   :  { %747 = vpow2.f32 %v355_v36 }
 0x1b6   :  { %v347_v39 = vpop.xlane.xlu0 %346 }
 0x1b7   :  { %v351_v40 = vsub.f32 %v321_v25, %v347_v39  ;;  %v469_v25 = vmul.f32 %v719_v19, %v468_v20  ;;  %v746_v39 = vld [vmem:[#allocation4] ss:$0 sm:$0xff] }
 0x1b9   :  { %v748_v42 = vpop.eup %747  ;;  %v353_v43 = vmul.f32 1.442695, %v351_v40  ;;  %v545_v40 = vld [vmem:[%s1183_s4] sm:$0xff] }
 0x1ba   :  { %v364_v44 = vsel %vm362_vm4, 0.0, %v748_v42 }
 0x1bb   :  { %749 = vpow2.f32 %v353_v43  ;;  %v368_v45 = vsel %vm344_vm1, %v364_v44, 0.0 }
 0x1bc   :  { %369 = vadd.xlane.f32.xlu1 %v368_v45 }
 0x1c1   :  { %v750_v47 = vpop.eup %749 }
 0x1c2   :  { %v363_v48 = vsel %vm361_vm5, 0.0, %v750_v47 }
 0x1c3   :  { %v365_v49 = vsel %vm344_vm1, %v363_v48, 0.0 }
 0x1c4   :  { %366 = vadd.xlane.f32.xlu1 %v365_v49 }
 0x22f   :  { %v370_v60 = vpop.xlane.xlu1 %369 }
 0x230   :  { %v372_v61 = vmax.f32 %v370_v60, 1e-30 }
 0x232   :  { %751 = vrcp.f32 %v372_v61 }
 0x237   :  { %v367_v62 = vpop.xlane.xlu1 %366 }
 0x238   :  { %v752_v63 = vpop.eup %751  ;;  %v371_v0 = vmax.f32 %v367_v62, 1e-30 }
 0x239   :  { %v1143_v1 = vmul.f32 %v752_v63, %v364_v44  ;;  %v546_v44 = vld [vmem:[%s1183_s4 + $0x8] sm:$0xff]  ;;  %s976_s4 = smov [#allocation17]  }
 0x23a   :  { %753 = vrcp.f32 %v371_v0  ;;  %s635_s1 = sshll.u32 %s976_s4, 4  ;;  %s636_s1 = int_to_ptr.vmem [resolvable:$true] %s635_s1 }
 0x23b   :  { %v378_v2 = vpack.c.bf16 %v1143_v1, %v1143_v1 }
 0x23d   :  { %691 = vmatmul.msk.bf16.vlgmr.msrb.gmra.mxu2 %vm344_vm1, %v378_v2 }
 0x240   :  { %v754_v3 = vpop.eup %753 }
 0x241   :  { %v1148_v4 = vmul.f32 %v754_v3, %v363_v48 }
 0x243   :  { %v377_v5 = vpack.c.bf16 %v1148_v4, %v1148_v4 }
 0x245   :  { %690 = vmatmul.msk.bf16.vlgmr.msrb.gmra.mxu1 %vm344_vm1, %v377_v5 }
 0x2c0   :  { %v414_v7 = vpop.f32.mrf.mxu2 }
 0x2c2   :  { %v395_v8 = vpop.f32.mrf.mxu1 }
 0x2c3   :  { %v418_v9 = vpack.c.bf16 %v414_v7, %v395_v8 }
 0x2c5   :  { %700 = vmatmul.msk.bf16.vlgmr.msrb.gmra.mxu3 %vm197_vm0, %v418_v9 }
 0x2c8   :  { %v416_v10 = vpop.f32.mrf.mxu2 }
 0x2ca   :  { %v397_v11 = vpop.f32.mrf.mxu1 }
 0x348   :  { %v451_v21 = vpop.f32.mrf.mxu3 }
 0x349   :  { %v452_v22 = vadd.f32 %v745_v15, %v451_v21 }
 0x34b   :  { %v457_v24 = vmul.f32 %v456_v18, %v452_v22 }
 0x34d   :  { %v464_v26 = vadd.f32 %v462_v23, %v457_v24 }
 0x34f   :  { %v471_v28 = vadd.f32 %v469_v25, %v464_v26 }
 0x350   :  { %v453_v30 = vpop.f32.mrf.mxu3 }
 0x351   :  { %v454_v31 = vadd.f32 %v745_v15, %v453_v30  ;;  %v473_v32 = vsel %vm197_vm0, %v471_v28, 0.0  ;;  %v551_v15 = vlaneseq }
 0x352   :  { %474 = vadd.xlane.f32.xlu2 %v473_v32 }
 0x353   :  { %v458_v34 = vmul.f32 %v456_v18, %v454_v31  ;;  %v552_v16 = vand.u32 127, %v551_v15  ;;  %v975_v18 = vmov 0.0  }
 0x355   :  { %v465_v36 = vadd.f32 %v463_v33, %v458_v34  ;;  %v722_v33 = vld [vmem:[#allocation11] sm:$0xff]  }
 0x356   :  { %v723_v34 = vunpack.c.l.bf16 %v722_v33 }
 0x357   :  { %v472_v37 = vadd.f32 %v470_v35, %v465_v36 }
 0x359   :  { %v476_v38 = vsel %vm197_vm0, %v472_v37, 0.0 }
 0x35a   :  { %477 = vadd.xlane.f32.xlu2 %v476_v38  ;;  %v724_v38 = vunpack.c.h.bf16 %v722_v33 }
 0x372   :  { %554 = vperm.xlu2 %741, %v545_v40  }
 0x37a   :  { %557 = vperm.xlu2 %741, %v546_v44  }
 0x3c5   :  { %v475_v41 = vpop.xlane.xlu2 %474 }
 0x3c6   :  { %v483_v42 = vadd.f32 %v746_v39, %v475_v41 }
 0x3c8   :  { %v701_v43 = vmul.f32 -1.442695, %v483_v42 }
 0x3ca   :  { %755 = vpow2.f32 %v701_v43 }
 0x3cd   :  { %v478_v45 = vpop.xlane.xlu2 %477 }
 0x3ce   :  { %v484_v46 = vadd.f32 %v746_v39, %v478_v45 }
 0x3d0   :  { %v756_v47 = vpop.eup %755  ;;  %v702_v48 = vmul.f32 -1.442695, %v484_v46 }
 0x3d1   :  { %v491_v49 = vadd.f32 1.0, %v756_v47 }
 0x3d2   :  { %757 = vpow2.f32 %v702_v48 }
 0x3d3   :  { %759 = vrcp.f32 %v491_v49  ;;  %v504_v55 = vand.u32 2147483648, %v491_v49  ;;  %v502_v57 = vand.u32 2147483647, %v491_v49  ;;  %vm498_vm8 = vweird.f32 %v491_v49 }
 0x3d5   :  { %v505_v60 = vor.u32 1.1754944e-38, %v504_v55  ;;  %vm503_vm11 = vcmp.eq.f32.partialorder %v502_v57, 8.507059e+37  ;;  %v555_v14 = vpop.permute.xlu2 %554 }
 0x3d6   :  { %vm559_vm0 = vcmp.eq.s32.totalorder %v555_v14, %v552_v16 }
 0x3d7   :  { %v703_v19 = vsel %vm559_vm0, 1.0, %v975_v18 }
 0x3d8   :  { %v758_v50 = vpop.eup %757  ;;  %v565_v21 = vpack.c.bf16 %v703_v19, %v703_v19 }
 0x3d9   :  { %v760_v51 = vpop.eup %759  ;;  %v492_v52 = vadd.f32 1.0, %v758_v50 }
 0x3da   :  { %v494_v53 = vmul.f32 %v760_v51, %v491_v49  ;;  %vm499_vm7 = vweird.f32 %v760_v51  ;;  %v575_v23 = vsel %vm382_vm6, %v565_v21, 0 }
 0x3db   :  { %761 = vrcp.f32 %v492_v52  ;;  %vm500_vm9 = vmor %vm498_vm8, %vm499_vm7  ;;  %v519_v3 = vand.u32 2147483648, %v492_v52  ;;  %v517_v6 = vand.u32 2147483647, %v492_v52  ;;  %vm513_vm13 = vweird.f32 %v492_v52  ;;  %584 = vmatpush.bf16.msra.mxu0 %v575_v23 }
 0x3dc   :  { %v495_v54 = vsub.f32 1.0, %v494_v53 }
 0x3dd   :  { %v520_v8 = vor.u32 1.1754944e-38, %v519_v3  ;;  %vm518_vm15 = vcmp.eq.f32.partialorder %v517_v6, 8.507059e+37  ;;  %v558_v17 = vpop.permute.xlu2 %557 }
 0x3de   :  { %v496_v56 = vmul.f32 %v760_v51, %v495_v54  ;;  %vm560_vm2 = vcmp.eq.s32.totalorder %v558_v17, %v552_v16 }
 0x3df   :  { %v704_v20 = vsel %vm560_vm2, 1.0, %v975_v18 }
 0x3e0   :  { %v497_v58 = vadd.f32 %v760_v51, %v496_v56  ;;  %v566_v22 = vpack.c.bf16 %v704_v20, %v704_v20 }
 0x3e1   :  { %v762_v59 = vpop.eup %761 }
 0x3e2   :  { %v509_v61 = vmul.f32 %v762_v59, %v492_v52  ;;  %v501_v62 = vsel %vm500_vm9, %v760_v51, %v497_v58  ;;  %vm514_vm12 = vweird.f32 %v762_v59  ;;  %v594_v24 = vsel %vm382_vm6, %v566_v22, 0 }
 0x3e3   :  { %v506_v63 = vsel %vm503_vm11, %v505_v60, %v501_v62  ;;  %vm515_vm14 = vmor %vm513_vm13, %vm514_vm12  ;;  %603 = vmatpush.bf16.msra.mxu1 %v594_v24 }
 0x3e4   :  { %v526_v0 = vsub.f32 1.0, %v506_v63  ;;  %524 = vst.msk [vmem:[#allocation3] sm:$0xff] %vm523_vm10, %v506_v63  ;;  %v510_v2 = vsub.f32 1.0, %v509_v61 }
 0x3e6   :  { %530 = vperm.xlu0 %739, %v526_v0   ;;  %v511_v5 = vmul.f32 %v762_v59, %v510_v2 }
 0x3e8   :  { %v512_v7 = vadd.f32 %v762_v59, %v511_v5 }
 0x3ea   :  { %v516_v9 = vsel %vm515_vm14, %v762_v59, %v512_v7 }
 0x3eb   :  { %v521_v10 = vsel %vm518_vm15, %v520_v8, %v516_v9  ;;  %v609_v13 = vld [vmem:[#allocation3] sm:$0xff] }
 0x3ec   :  { %v527_v11 = vsub.f32 1.0, %v521_v10  ;;  %525 = vst.msk [vmem:[#allocation3 + $0x8] sm:$0xff] %vm523_vm10, %v521_v10 }
 0x3ee   :  { %535 = vperm.xlu1 %740, %v527_v11  }
 0x3f3   :  { %v610_v12 = vld [vmem:[#allocation3 + $0x8] sm:$0xff] }
 0x3f4   :  { %622 = vperm.xlu2 %741, %v610_v12  }
 0x3f6   :  { %617 = vperm.xlu1 %740, %v609_v13  }
 0x44e   :  { %v623_v39 = vpop.permute.xlu2 %622 }
 0x458   :  { %v531_v25 = vpop.permute.xlu0 %530 }
 0x459   :  { %v538_v26 = vmul.f32 %v531_v25, %v1148_v4 }
 0x45b   :  { %v540_v27 = vpack.c.bf16 %v538_v26, %v538_v26 }
 0x45d   :  { %543 = vst.msk [vmem:[#allocation2] sm:$0xf] %vm542_vm3, %v540_v27 }
 0x460   :  { %v536_v28 = vpop.permute.xlu1 %535 }
 0x461   :  { %v539_v29 = vmul.f32 %v536_v28, %v1143_v1  ;;  %v626_v1 = vmul.f32 %v724_v38, %v623_v39 }
 0x463   :  { %v541_v30 = vpack.c.bf16 %v539_v29, %v539_v29 }
 0x464   :  { %v567_v31 = vld [vmem:[#allocation2] sm:$0xf] }
 0x465   :  { %544 = vst.msk [vmem:[#allocation2 + $0x4] sm:$0xf] %vm542_vm3, %v541_v30  ;;  %705 = vmatmul.msk.bf16.vlgmr.msra.gmra.mxu0 %vm344_vm1, %v567_v31 }
 0x468   :  { %v618_v35 = vpop.permute.xlu1 %617 }
 0x469   :  { %v625_v36 = vmul.f32 %v723_v34, %v618_v35 }
 0x46c   :  { %v568_v32 = vld [vmem:[#allocation2 + $0x4] sm:$0xf] }
 0x46d   :  { %706 = vmatmul.msk.bf16.vlgmr.msra.gmra.mxu1 %vm344_vm1, %v568_v32 }
 0x4e2   :  { %v586_v37 = vpop.f32.mrf.mxu0 }
 0x4e3   :  { %v627_v4 = vadd.f32 %v625_v36, %v586_v37 }
 0x4e5   :  { %629 = vst [vmem:[#allocation17] sm:$0xff] %v627_v4 }
 0x4ea   :  { %v588_v40 = vpop.f32.mrf.mxu0  ;;  %v605_v41 = vpop.f32.mrf.mxu1 }
 0x4eb   :  { %v628_v42 = vadd.f32 %v626_v1, %v605_v41 }
 0x4ed   :  { %630 = vst [vmem:[#allocation17 + $0x8] sm:$0xff] %v628_v42 }
 0x4ee   :  { %643 = dma.vmem_to_hbm [thread:$0]  %s636_s1, 256, %s638_s21, [#allocation7], %s977_s22, %s977_s22, %s978_s8  }
 0x4f2   :  { %v607_v43 = vpop.f32.mrf.mxu1 }
 0x4f3   :  { %963 = dma.done.wait [#allocation7], 256  }
 0x4f4   :  { %964 = vsyncadd [#allocation7], 4294967040 }
 0x4f5   :  { %648 = vsyncpa [#allocation6], 1 }
 0x4f6   :  { %649 = vsyncpa [#allocation9], 1 }
 0x4f7   :  { %650 = vsyncpa [#allocation12], 1 }
 0x4f8   :  { %651 = vsyncpa [#allocation15], 1 }
 0x4f9   :  { %652 = vsyncpa [#allocation7], 1 }

</bundles_post_ra>
